<compile_context>
chip_gen: v5e
topology: v5e:2x2
jax: 0.10.0
libtpu: 0.0.40
codegen_flags: <defaults>
</compile_context>

<pallas_src>
import jax
import jax.numpy as jnp
from jax.experimental import pallas as pl
from jax.experimental.pallas import tpu as pltpu

_MAX_CHUNK = 128     # timesteps processed per grid step
_UNROLL_LIMIT = 32   # fully unroll the serial loop at/below this chunk length


def _make_kernel(*, H, TC, B_pad, G, Din_ext, T_real, needs_mask, unrolled):
    """Build the chunked A2CCritic kernel (all sizes are Python ints)."""

    def kernel(obs_ref, h0_ref, w1t_ref, wi_ref, wh_ref, gb_ref, w2_ref,
               v_ref, hout_ref, gx_scr, hall_scr):
        c = pl.program_id(0)

        # Load the initial hidden state into the resident carry (first chunk only).
        @pl.when(c == 0)
        def _():
            hout_ref[...] = h0_ref[...]

        # ---- batched, h-independent phase (whole chunk, off the serial path) ----
        # fc1 bias is folded in via the ones column appended to obs in the wrapper.
        obs = obs_ref[0].reshape(TC * B_pad, Din_ext)
        x = jnp.maximum(
            jnp.dot(obs, w1t_ref[...], preferred_element_type=jnp.float32), 0.0)
        # Input-side GRU gates for every timestep of the chunk; gate biases
        # (b_ir+b_hr | b_iz+b_hz | b_in) pre-folded into gb row 0.
        gx = jnp.dot(x, wi_ref[...], preferred_element_type=jnp.float32) + gb_ref[0:1, :]
        gx_scr[...] = gx.reshape(TC, B_pad, G)

        wh = wh_ref[...]          # (H, G): [W_hr | W_hz | W_hn | 0] lane-packed
        bhn = gb_ref[1:2, :]      # (1, G): b_hn in the n-gate lanes, 0 elsewhere

        # ---- serial recurrence: one fused matmul + elementwise per step ----
        def step(t, h_prev):
            gx_t = gx_scr[t]                                   # (B_pad, G)
            gh = jnp.dot(h_prev, wh, preferred_element_type=jnp.float32) + bhn
            s = gx_t + gh
            r = jax.nn.sigmoid(s[:, 0:H])
            z = jax.nn.sigmoid(s[:, H:2 * H])
            n = jnp.tanh(gx_t[:, 2 * H:3 * H] + r * gh[:, 2 * H:3 * H])
            h_new = (1.0 - z) * n + z * h_prev
            if needs_mask:       # freeze h on zero-padded timesteps (last chunk only)
                h_new = jnp.where(c * TC + t < T_real, h_new, h_prev)
            hall_scr[t] = h_new
            return h_new

        h = hout_ref[...]
        if unrolled:
            for t in range(TC):
                h = step(t, h)
        else:
            h = jax.lax.fori_loop(0, TC, step, h)
        hout_ref[...] = h        # resident carry; written back to HBM once at grid end

        # ---- batched value head (hoisted off the serial path) ----
        h_all = hall_scr[...].reshape(TC * B_pad, H)
        v_ref[0] = (jnp.dot(h_all, w2_ref[...], preferred_element_type=jnp.float32)
                    + gb_ref[2:3, 0:1])                        # + b2

    return kernel


def _pack_params(params, G):
    """Pre-transpose / lane-pack PyTorch-convention parameters for the kernel."""
    f32 = jnp.float32
    H = params["w1"].shape[0]

    # fc1: [W1^T ; b1] so the ones column on obs folds the bias into the matmul.
    w1t_ext = jnp.concatenate(
        [params["w1"].T, params["b1"][None, :]], axis=0).astype(f32)      # (Din+1, H)

    wih = params["w_ih"].astype(f32)                                      # (3H, H)
    whh = params["w_hh"].astype(f32)                                      # (3H, H)
    wi_pack = jnp.zeros((H, G), f32).at[:, :3 * H].set(wih.T)             # [W_ir|W_iz|W_in|0]
    wh_pack = jnp.zeros((H, G), f32).at[:, :3 * H].set(whh.T)             # [W_hr|W_hz|W_hn|0]

    b_ih = params["b_ih"].astype(f32)
    b_hh = params["b_hh"].astype(f32)
    row0 = jnp.zeros((G,), f32)
    row0 = row0.at[0:H].set(b_ih[0:H] + b_hh[0:H])            # r: input+hidden biases
    row0 = row0.at[H:2 * H].set(b_ih[H:2 * H] + b_hh[H:2 * H])  # z: input+hidden biases
    row0 = row0.at[2 * H:3 * H].set(b_ih[2 * H:3 * H])        # n: input-side bias
    row1 = jnp.zeros((G,), f32).at[2 * H:3 * H].set(b_hh[2 * H:3 * H])  # n: hidden bias
    row2 = jnp.zeros((G,), f32).at[0].set(params["b2"].astype(f32)[0])  # fc2 bias
    gbias = jnp.stack([row0, row1, row2])                                 # (3, G)

    w2col = params["w2"].T.astype(f32)                                    # (H, 1)
    return w1t_ext, wi_pack, wh_pack, gbias, w2col


def a2c_critic_forward(inputs, hidden, params):
    """A2CCritic forward.

    inputs: (B, Din) for a single step (the PyTorch module's forward), or
            (T, B, Din) for a T-step rollout done in one pallas_call.
    hidden: anything reshapeable to (B, H).
    Returns: single step -> (v (B,1), h (B,H));
             sequence    -> (v_seq (T,B,1), h_final (B,H)).
    """
    single_step = inputs.ndim == 2
    obs_seq = (inputs[None] if single_step else inputs).astype(jnp.float32)
    T, B, Din = obs_seq.shape
    H = params["w1"].shape[0]
    h0 = hidden.reshape(-1, H).astype(jnp.float32)
    assert h0.shape[0] == B, "hidden batch must match inputs batch"

    B_pad = max(8, ((B + 7) // 8) * 8)
    TC = T if T <= _MAX_CHUNK else _MAX_CHUNK
    num_chunks = (T + TC - 1) // TC
    T_pad = num_chunks * TC
    G = ((3 * H + 127) // 128) * 128            # lane width of packed gate slabs

    # Pad batch/time and append a constant-1 column (folds the fc1 bias).
    obs_p = jnp.pad(obs_seq, ((0, T_pad - T), (0, B_pad - B), (0, 0)))
    obs_ext = jnp.concatenate(
        [obs_p, jnp.ones((T_pad, B_pad, 1), jnp.float32)], axis=-1)
    obs_ext = obs_ext.reshape(num_chunks, TC, B_pad, Din + 1)
    h0p = jnp.pad(h0, ((0, B_pad - B), (0, 0)))

    w1t_ext, wi_pack, wh_pack, gbias, w2col = _pack_params(params, G)

    kernel = _make_kernel(H=H, TC=TC, B_pad=B_pad, G=G, Din_ext=Din + 1,
                          T_real=T, needs_mask=(T_pad != T),
                          unrolled=(TC <= _UNROLL_LIMIT))

    const2 = lambda c: (0, 0)   # constant index_map -> block DMA'd once, stays resident
    v_all, h_fin = pl.pallas_call(
        kernel,
        out_shape=(jax.ShapeDtypeStruct((num_chunks, TC * B_pad, 1), jnp.float32),
                   jax.ShapeDtypeStruct((B_pad, H), jnp.float32)),
        grid_spec=pltpu.PrefetchScalarGridSpec(
            num_scalar_prefetch=0,
            grid=(num_chunks,),
            in_specs=[
                pl.BlockSpec((1, TC, B_pad, Din + 1), lambda c: (c, 0, 0, 0)),  # obs chunk
                pl.BlockSpec((B_pad, H), const2),       # h0 (read at c==0)
                pl.BlockSpec((Din + 1, H), const2),     # fc1 [W^T ; b]
                pl.BlockSpec((H, G), const2),           # input-gate weights, lane-packed
                pl.BlockSpec((H, G), const2),           # hidden-gate weights, lane-packed
                pl.BlockSpec((3, G), const2),           # packed biases (+ b2)
                pl.BlockSpec((H, 1), const2),           # fc2 weight column
            ],
            out_specs=[
                pl.BlockSpec((1, TC * B_pad, 1), lambda c: (c, 0, 0)),  # values per chunk
                pl.BlockSpec((B_pad, H), const2),                       # final hidden (carry)
            ],
            scratch_shapes=[
                pltpu.VMEM((TC, B_pad, G), jnp.float32),   # precomputed input-side gates
                pltpu.VMEM((TC, B_pad, H), jnp.float32),   # per-step h (for batched fc2)
            ],
        ),
        compiler_params=pltpu.CompilerParams(
            dimension_semantics=("arbitrary",),   # recurrent carry across chunks
        ),
    )(obs_ext, h0p, w1t_ext, wi_pack, wh_pack, gbias, w2col)

    v_seq = v_all.reshape(T_pad, B_pad, 1)[:T, :B, :]
    h_final = h_fin[:B]
    if single_step:
        return v_seq[0], h_final
    return v_seq, h_final


# ------------------------- init + pure-JAX reference -------------------------

def _orthogonal(key, shape, gain=1.0):
    # Mimic torch.nn.init.orthogonal_ (QR of a gaussian, sign-corrected).
    rows, cols = shape
    n = max(rows, cols)
    a = jax.random.normal(key, (n, n), dtype=jnp.float32)
    q, r = jnp.linalg.qr(a)
    q = q * jnp.sign(jnp.diag(r))
    return gain * q[:rows, :cols]


def init_params(key, input_dim, hidden_dim):
    k1, k2, k3, k4, k5, k6 = jax.random.split(key, 6)
    bound = float(hidden_dim) ** -0.5
    return {
        # fc1: orthogonal(std=1.0), bias=0   (layer_norm=True path)
        "w1": _orthogonal(k1, (hidden_dim, input_dim), gain=1.0),
        "b1": jnp.zeros((hidden_dim,), jnp.float32),
        # GRUCell: PyTorch default uniform(-1/sqrt(H), 1/sqrt(H))
        "w_ih": jax.random.uniform(k2, (3 * hidden_dim, hidden_dim), jnp.float32, -bound, bound),
        "b_ih": jax.random.uniform(k3, (3 * hidden_dim,), jnp.float32, -bound, bound),
        "w_hh": jax.random.uniform(k4, (3 * hidden_dim, hidden_dim), jnp.float32, -bound, bound),
        "b_hh": jax.random.uniform(k5, (3 * hidden_dim,), jnp.float32, -bound, bound),
        # fc2: value head (out_dim = 1), orthogonal(std=1.0), bias=0
        "w2": _orthogonal(k6, (1, hidden_dim), gain=1.0),
        "b2": jnp.zeros((1,), jnp.float32),
    }


def reference_step(obs, hidden, params):
    H = params["w1"].shape[0]
    x = jax.nn.relu(obs @ params["w1"].T + params["b1"])
    h_in = hidden.reshape(-1, H)
    gx = x @ params["w_ih"].T + params["b_ih"]
    gh = h_in @ params["w_hh"].T + params["b_hh"]
    r = jax.nn.sigmoid(gx[:, :H] + gh[:, :H])
    z = jax.nn.sigmoid(gx[:, H:2 * H] + gh[:, H:2 * H])
    n = jnp.tanh(gx[:, 2 * H:] + r * gh[:, 2 * H:])
    h = (1.0 - z) * n + z * h_in
    v = h @ params["w2"].T + params["b2"]
    return v, h


if __name__ == "__main__":
    B, INPUT_DIM, HIDDEN_DIM, T = 4, 16, 32, 8

    key = jax.random.PRNGKey(0)
    kp, ko, kh = jax.random.split(key, 3)

    params = init_params(kp, INPUT_DIM, HIDDEN_DIM)
    obs_seq = jax.random.normal(ko, (T, B, INPUT_DIM), dtype=jnp.float32)
    h0 = jax.random.normal(kh, (B, HIDDEN_DIM), dtype=jnp.float32)

    # --- single step: exactly the module's forward(inputs, hidden) ---
    v, h = a2c_critic_forward(obs_seq[0], h0, params)
    v, h = jax.block_until_ready(v), jax.block_until_ready(h)
    v_ref, h_ref = reference_step(obs_seq[0], h0, params)
    assert v.shape == (B, 1) and h.shape == (B, HIDDEN_DIM)
    assert jnp.allclose(v, v_ref, atol=1e-4), "value mismatch (single step)"
    assert jnp.allclose(h, h_ref, atol=1e-4), "hidden mismatch (single step)"

    # --- T-step rollout: one pallas_call / one grid step, time loop in-kernel ---
    v_seq, h_T = a2c_critic_forward(obs_seq, h0, params)
    v_seq, h_T = jax.block_until_ready(v_seq), jax.block_until_ready(h_T)

    h_r = h0
    for t in range(T):
        v_r, h_r = reference_step(obs_seq[t], h_r, params)
        assert jnp.allclose(v_seq[t], v_r, atol=1e-3), f"value mismatch at t={t}"
    assert jnp.allclose(h_T, h_r, atol=1e-3), "final hidden mismatch (rollout)"

    print("KERNEL_OK")
</pallas_src>

<mosaic_0001>
module attributes {stable_mosaic.version = 11 : i64} {
  func.func @kernel(%arg0: i32, %arg1: memref<1x1x8x17xf32, #tpu.memory_space<vmem>>, %arg2: memref<8x32xf32, #tpu.memory_space<vmem>>, %arg3: memref<17x32xf32, #tpu.memory_space<vmem>>, %arg4: memref<32x128xf32, #tpu.memory_space<vmem>>, %arg5: memref<32x128xf32, #tpu.memory_space<vmem>>, %arg6: memref<3x128xf32, #tpu.memory_space<vmem>>, %arg7: memref<32x1xf32, #tpu.memory_space<vmem>>, %arg8: memref<1x8x1xf32, #tpu.memory_space<vmem>>, %arg9: memref<8x32xf32, #tpu.memory_space<vmem>>, %arg10: memref<1x8x128xf32, #tpu.memory_space<vmem>>, %arg11: memref<1x8x32xf32, #tpu.memory_space<vmem>>) attributes {dimension_semantics = [#tpu.dimension_semantics<arbitrary>], iteration_bounds = array<i64: 1>, scalar_prefetch = 0 : i64, scratch_operands = 2 : i64, tpu.core_type = #tpu.core_type<tc>, window_params = [{transform_indices = @transform_0, window_bounds = array<i64: 1, 1, 8, 17>}, {pipeline_mode = #tpu.pipeline_mode<synchronous>, transform_indices = @transform_1, window_bounds = array<i64: 8, 32>}, {pipeline_mode = #tpu.pipeline_mode<synchronous>, transform_indices = @transform_2, window_bounds = array<i64: 17, 32>}, {pipeline_mode = #tpu.pipeline_mode<synchronous>, transform_indices = @transform_3, window_bounds = array<i64: 32, 128>}, {pipeline_mode = #tpu.pipeline_mode<synchronous>, transform_indices = @transform_4, window_bounds = array<i64: 32, 128>}, {pipeline_mode = #tpu.pipeline_mode<synchronous>, transform_indices = @transform_5, window_bounds = array<i64: 3, 128>}, {pipeline_mode = #tpu.pipeline_mode<synchronous>, transform_indices = @transform_6, window_bounds = array<i64: 32, 1>}, {transform_indices = @transform_7, window_bounds = array<i64: 1, 8, 1>}, {pipeline_mode = #tpu.pipeline_mode<synchronous>, transform_indices = @transform_8, window_bounds = array<i64: 8, 32>}]} {
    %c0_i32 = arith.constant 0 : i32
    %0 = arith.cmpi eq, %arg0, %c0_i32 : i32
    %1 = arith.extui %0 : i1 to i32
    %c0_i32_0 = arith.constant 0 : i32
    %2 = arith.cmpi ne, %1, %c0_i32_0 : i32
    scf.if %2 {
      %c0_42 = arith.constant 0 : index
      %c0_43 = arith.constant 0 : index
      %62 = vector.load %arg2[%c0_42, %c0_43] : memref<8x32xf32, #tpu.memory_space<vmem>>, vector<8x32xf32>
      %c0_44 = arith.constant 0 : index
      %c0_45 = arith.constant 0 : index
      %63 = vector.load %arg9[%c0_44, %c0_45] : memref<8x32xf32, #tpu.memory_space<vmem>>, vector<8x32xf32>
      tpu.vector_store %arg9[%c0_44, %c0_45], %62 {strides = array<i32>} : memref<8x32xf32, #tpu.memory_space<vmem>>, vector<8x32xf32>,
    } else {
    }
    %c0 = arith.constant 0 : index
    %c0_1 = arith.constant 0 : index
    %c0_2 = arith.constant 0 : index
    %c0_3 = arith.constant 0 : index
    %3 = vector.load %arg1[%c0, %c0_1, %c0_2, %c0_3] : memref<1x1x8x17xf32, #tpu.memory_space<vmem>>, vector<1x1x8x17xf32>
    %4 = vector.shape_cast %3 : vector<1x1x8x17xf32> to vector<1x8x17xf32>
    %5 = vector.shape_cast %4 : vector<1x8x17xf32> to vector<8x17xf32>
    %c0_4 = arith.constant 0 : index
    %c0_5 = arith.constant 0 : index
    %6 = vector.load %arg3[%c0_4, %c0_5] : memref<17x32xf32, #tpu.memory_space<vmem>>, vector<17x32xf32>
    %cst = arith.constant dense<0.000000e+00> : vector<8x32xf32>
    %7 = tpu.matmul %5, %6, %cst {dimension_numbers = #tpu.dot_dimension_numbers<[1], [0], [0], [1], [0, 0, 1, 1], [], []>} : vector<8x17xf32>, vector<17x32xf32>, vector<8x32xf32> -> vector<8x32xf32>
    %cst_6 = arith.constant 0.000000e+00 : f32
    %8 = vector.broadcast %cst_6 : f32 to vector<8x32xf32>
    %9 = arith.maximumf %7, %8 : vector<8x32xf32>
    %c0_7 = arith.constant 0 : index
    %c0_8 = arith.constant 0 : index
    %10 = vector.load %arg4[%c0_7, %c0_8] : memref<32x128xf32, #tpu.memory_space<vmem>>, vector<32x128xf32>
    %cst_9 = arith.constant dense<0.000000e+00> : vector<8x128xf32>
    %11 = tpu.matmul %9, %10, %cst_9 {dimension_numbers = #tpu.dot_dimension_numbers<[1], [0], [0], [1], [0, 0, 1, 1], [], []>} : vector<8x32xf32>, vector<32x128xf32>, vector<8x128xf32> -> vector<8x128xf32>
    %c0_10 = arith.constant 0 : index
    %c0_11 = arith.constant 0 : index
    %12 = vector.load %arg6[%c0_10, %c0_11] : memref<3x128xf32, #tpu.memory_space<vmem>>, vector<1x128xf32>
    %13 = vector.broadcast %12 : vector<1x128xf32> to vector<8x128xf32>
    %14 = arith.addf %11, %13 : vector<8x128xf32>
    %15 = vector.shape_cast %14 : vector<8x128xf32> to vector<1x8x128xf32>
    %c0_12 = arith.constant 0 : index
    %c0_13 = arith.constant 0 : index
    %c0_14 = arith.constant 0 : index
    %16 = vector.load %arg10[%c0_12, %c0_13, %c0_14] : memref<1x8x128xf32, #tpu.memory_space<vmem>>, vector<1x8x128xf32>
    tpu.vector_store %arg10[%c0_12, %c0_13, %c0_14], %15 {strides = array<i32>} : memref<1x8x128xf32, #tpu.memory_space<vmem>>, vector<1x8x128xf32>,
    %c0_15 = arith.constant 0 : index
    %c0_16 = arith.constant 0 : index
    %17 = vector.load %arg5[%c0_15, %c0_16] : memref<32x128xf32, #tpu.memory_space<vmem>>, vector<32x128xf32>
    %c1 = arith.constant 1 : index
    %c0_17 = arith.constant 0 : index
    %18 = vector.load %arg6[%c1, %c0_17] : memref<3x128xf32, #tpu.memory_space<vmem>>, vector<1x128xf32>
    %c0_18 = arith.constant 0 : index
    %c0_19 = arith.constant 0 : index
    %19 = vector.load %arg9[%c0_18, %c0_19] : memref<8x32xf32, #tpu.memory_space<vmem>>, vector<8x32xf32>
    %c0_20 = arith.constant 0 : index
    %c0_21 = arith.constant 0 : index
    %c0_22 = arith.constant 0 : index
    %20 = vector.load %arg10[%c0_20, %c0_21, %c0_22] : memref<1x8x128xf32, #tpu.memory_space<vmem>>, vector<1x8x128xf32>
    %21 = vector.shape_cast %20 : vector<1x8x128xf32> to vector<8x128xf32>
    %cst_23 = arith.constant dense<0.000000e+00> : vector<8x128xf32>
    %22 = tpu.matmul %19, %17, %cst_23 {dimension_numbers = #tpu.dot_dimension_numbers<[1], [0], [0], [1], [0, 0, 1, 1], [], []>} : vector<8x32xf32>, vector<32x128xf32>, vector<8x128xf32> -> vector<8x128xf32>
    %23 = vector.broadcast %18 : vector<1x128xf32> to vector<8x128xf32>
    %24 = arith.addf %22, %23 : vector<8x128xf32>
    %25 = arith.addf %21, %24 : vector<8x128xf32>
    %26 = vector.extract_strided_slice %25 {offsets = [0, 0], sizes = [8, 32], strides = [1, 1]} : vector<8x128xf32> to vector<8x32xf32>
    %27 = arith.negf %26 : vector<8x32xf32>
    %28 = math.exp %27 : vector<8x32xf32>
    %cst_24 = arith.constant 1.000000e+00 : f32
    %29 = vector.broadcast %cst_24 : f32 to vector<8x32xf32>
    %30 = arith.addf %29, %28 : vector<8x32xf32>
    %31 = arith.divf %29, %30 : vector<8x32xf32>
    %32 = vector.extract_strided_slice %25 {offsets = [0, 32], sizes = [8, 32], strides = [1, 1]} : vector<8x128xf32> to vector<8x32xf32>
    %33 = arith.negf %32 : vector<8x32xf32>
    %34 = math.exp %33 : vector<8x32xf32>
    %cst_25 = arith.constant 1.000000e+00 : f32
    %35 = vector.broadcast %cst_25 : f32 to vector<8x32xf32>
    %36 = arith.addf %35, %34 : vector<8x32xf32>
    %37 = arith.divf %35, %36 : vector<8x32xf32>
    %38 = vector.extract_strided_slice %21 {offsets = [0, 64], sizes = [8, 32], strides = [1, 1]} : vector<8x128xf32> to vector<8x32xf32>
    %39 = vector.extract_strided_slice %24 {offsets = [0, 64], sizes = [8, 32], strides = [1, 1]} : vector<8x128xf32> to vector<8x32xf32>
    %40 = arith.mulf %31, %39 : vector<8x32xf32>
    %41 = arith.addf %38, %40 : vector<8x32xf32>
    %42 = math.tanh %41 : vector<8x32xf32>
    %cst_26 = arith.constant 1.000000e+00 : f32
    %43 = vector.broadcast %cst_26 : f32 to vector<8x32xf32>
    %44 = arith.subf %43, %37 : vector<8x32xf32>
    %45 = arith.mulf %44, %42 : vector<8x32xf32>
    %46 = arith.mulf %37, %19 : vector<8x32xf32>
    %47 = arith.addf %45, %46 : vector<8x32xf32>
    %c0_27 = arith.constant 0 : index
    %c0_28 = arith.constant 0 : index
    %c0_29 = arith.constant 0 : index
    %48 = vector.load %arg11[%c0_27, %c0_28, %c0_29] : memref<1x8x32xf32, #tpu.memory_space<vmem>>, vector<1x8x32xf32>
    %49 = vector.shape_cast %48 : vector<1x8x32xf32> to vector<8x32xf32>
    %50 = vector.shape_cast %47 : vector<8x32xf32> to vector<1x8x32xf32>
    tpu.vector_store %arg11[%c0_27, %c0_28, %c0_29], %50 {strides = array<i32>} : memref<1x8x32xf32, #tpu.memory_space<vmem>>, vector<1x8x32xf32>,
    %c0_30 = arith.constant 0 : index
    %c0_31 = arith.constant 0 : index
    %51 = vector.load %arg9[%c0_30, %c0_31] : memref<8x32xf32, #tpu.memory_space<vmem>>, vector<8x32xf32>
    tpu.vector_store %arg9[%c0_30, %c0_31], %47 {strides = array<i32>} : memref<8x32xf32, #tpu.memory_space<vmem>>, vector<8x32xf32>,
    %c0_32 = arith.constant 0 : index
    %c0_33 = arith.constant 0 : index
    %c0_34 = arith.constant 0 : index
    %52 = vector.load %arg11[%c0_32, %c0_33, %c0_34] : memref<1x8x32xf32, #tpu.memory_space<vmem>>, vector<1x8x32xf32>
    %53 = vector.shape_cast %52 : vector<1x8x32xf32> to vector<8x32xf32>
    %c0_35 = arith.constant 0 : index
    %c0_36 = arith.constant 0 : index
    %54 = vector.load %arg7[%c0_35, %c0_36] : memref<32x1xf32, #tpu.memory_space<vmem>>, vector<32x1xf32>
    %cst_37 = arith.constant dense<0.000000e+00> : vector<8x1xf32>
    %55 = tpu.matmul %53, %54, %cst_37 {dimension_numbers = #tpu.dot_dimension_numbers<[1], [0], [0], [1], [0, 0, 1, 1], [], []>} : vector<8x32xf32>, vector<32x1xf32>, vector<8x1xf32> -> vector<8x1xf32>
    %c2 = arith.constant 2 : index
    %c0_38 = arith.constant 0 : index
    %56 = vector.load %arg6[%c2, %c0_38] : memref<3x128xf32, #tpu.memory_space<vmem>>, vector<1x1xf32>
    %57 = vector.broadcast %56 : vector<1x1xf32> to vector<8x1xf32>
    %58 = arith.addf %55, %57 : vector<8x1xf32>
    %c0_39 = arith.constant 0 : index
    %c0_40 = arith.constant 0 : index
    %c0_41 = arith.constant 0 : index
    %59 = vector.load %arg8[%c0_39, %c0_40, %c0_41] : memref<1x8x1xf32, #tpu.memory_space<vmem>>, vector<1x8x1xf32>
    %60 = vector.shape_cast %59 : vector<1x8x1xf32> to vector<8x1xf32>
    %61 = vector.shape_cast %58 : vector<8x1xf32> to vector<1x8x1xf32>
    tpu.vector_store %arg8[%c0_39, %c0_40, %c0_41], %61 {strides = array<i32>} : memref<1x8x1xf32, #tpu.memory_space<vmem>>, vector<1x8x1xf32>,
    return
  }
  func.func @transform_0(%arg0: i32) -> (i32, i32, i32, i32) {
    %c0_i32 = arith.constant 0 : i32
    %c0_i32_0 = arith.constant 0 : i32
    %c0_i32_1 = arith.constant 0 : i32
    %c0_i32_2 = arith.constant 0 : i32
    return %arg0, %c0_i32, %c0_i32_0, %c0_i32_1 : i32, i32, i32, i32
  }
  func.func @transform_1(%arg0: i32) -> (i32, i32) {
    %c0_i32 = arith.constant 0 : i32
    %c0_i32_0 = arith.constant 0 : i32
    %c0_i32_1 = arith.constant 0 : i32
    return %c0_i32, %c0_i32_0 : i32, i32
  }
  func.func @transform_2(%arg0: i32) -> (i32, i32) {
    %c0_i32 = arith.constant 0 : i32
    %c0_i32_0 = arith.constant 0 : i32
    %c0_i32_1 = arith.constant 0 : i32
    return %c0_i32, %c0_i32_0 : i32, i32
  }
  func.func @transform_3(%arg0: i32) -> (i32, i32) {
    %c0_i32 = arith.constant 0 : i32
    %c0_i32_0 = arith.constant 0 : i32
    %c0_i32_1 = arith.constant 0 : i32
    return %c0_i32, %c0_i32_0 : i32, i32
  }
  func.func @transform_4(%arg0: i32) -> (i32, i32) {
    %c0_i32 = arith.constant 0 : i32
    %c0_i32_0 = arith.constant 0 : i32
    %c0_i32_1 = arith.constant 0 : i32
    return %c0_i32, %c0_i32_0 : i32, i32
  }
  func.func @transform_5(%arg0: i32) -> (i32, i32) {
    %c0_i32 = arith.constant 0 : i32
    %c0_i32_0 = arith.constant 0 : i32
    %c0_i32_1 = arith.constant 0 : i32
    return %c0_i32, %c0_i32_0 : i32, i32
  }
  func.func @transform_6(%arg0: i32) -> (i32, i32) {
    %c0_i32 = arith.constant 0 : i32
    %c0_i32_0 = arith.constant 0 : i32
    %c0_i32_1 = arith.constant 0 : i32
    return %c0_i32, %c0_i32_0 : i32, i32
  }
  func.func @transform_7(%arg0: i32) -> (i32, i32, i32) {
    %c0_i32 = arith.constant 0 : i32
    %c0_i32_0 = arith.constant 0 : i32
    %c0_i32_1 = arith.constant 0 : i32
    return %arg0, %c0_i32, %c0_i32_0 : i32, i32, i32
  }
  func.func @transform_8(%arg0: i32) -> (i32, i32) {
    %c0_i32 = arith.constant 0 : i32
    %c0_i32_0 = arith.constant 0 : i32
    %c0_i32_1 = arith.constant 0 : i32
    return %c0_i32, %c0_i32_0 : i32, i32
  }
}

</mosaic_0001>

<bundles_post_ra>
// kernel: tpu_custom_call.1
= control target key start
LH: loop header
LB: loop body
LE: loop exit
PB: predicated region body
PF: predicated region fallthrough
CT: control target
= control target key end

     0   :  { %14 = vsyncpa [#allocation5], 0  ;;  %s591_s0 = inlined_call_operand.hbm [shape: f32[1,1,8,17], index: 0, kind: input, shape index: {}]   ;;  %s592_s1 = inlined_call_operand.hbm [shape: f32[8,32], index: 1, kind: input, shape index: {}]   ;;  %s593_s2 = inlined_call_operand.hbm [shape: f32[17,32], index: 2, kind: input, shape index: {}]   ;;  %s594_s3 = inlined_call_operand.vmem [shape: f32[32,128], index: 3, kind: input, shape index: {}]   ;;  %s595_s4 = inlined_call_operand.hbm [shape: f32[32,128], index: 4, kind: input, shape index: {}]   ;;  %s596_s5 = inlined_call_operand.hbm [shape: f32[3,128], index: 5, kind: input, shape index: {}]   ;;  %s597_s6 = inlined_call_operand.vmem [shape: f32[32,1], index: 6, kind: input, shape index: {}]   ;;  %s598_s7 = inlined_call_operand.vmem [shape: f32[1,8,1], index: 7, kind: output, shape index: {0}]   ;;  %s599_s8 = inlined_call_operand.hbm [shape: f32[8,32], index: 8, kind: output, shape index: {1}]  }
   0x1   :  { %15 = vsyncpa [#allocation8], 0 }
   0x2   :  { %16 = vsyncpa [#allocation11], 0  ;;  %s34_s29 = sshll.u32 %s592_s1, 4  ;;  %s35_s29 = int_to_ptr.hbm [resolvable:$true] %s34_s29 }
   0x3   :  { %17 = vsyncpa [#allocation6], 0  ;;  %s484_s30 = smov [#allocation7]   ;;  %s59_s12 = sshll.u32 %s595_s4, 4  ;;  %s60_s12 = int_to_ptr.hbm [resolvable:$true] %s59_s12 }
   0x4   :  { %s36_s9 = sshll.u32 %s484_s30, 4  ;;  %s485_s13 = smov [#allocation10]   ;;  %s37_s9 = int_to_ptr.vmem [resolvable:$true] %s36_s9 }
   0x5   :  { %39 = dma.hbm_to_vmem [thread:$0]  %s35_s29, 128, %s37_s9, [#allocation8]  }
   0x6   :  { %s61_s14 = sshll.u32 %s485_s13, 4  ;;  %s23_s17 = sshll.u32 %s591_s0, 4  ;;  %s62_s14 = int_to_ptr.vmem [resolvable:$true] %s61_s14  ;;  %s24_s17 = int_to_ptr.hbm [resolvable:$true] %s23_s17 }
   0x7   :  { %s486_s1 = smov 128   ;;  %s487_s18 = smov 8  }
   0x8   :  { %67 = dma.hbm_to_vmem [thread:$0]  %s60_s12, 512, %s62_s14, [#allocation11], %s486_s1, %s486_s1, %s487_s18  }
   0x9   :  { %s44_s21 = sshll.u32 %s593_s2, 4  ;;  %s488_s22 = smov [#allocation4]   ;;  %s45_s21 = int_to_ptr.hbm [resolvable:$true] %s44_s21 }
   0xa   :  { %s25_s23 = sshll.u32 %s488_s22, 4  ;;  %s489_s4 = smov [#allocation9]   ;;  %s26_s23 = int_to_ptr.vmem [resolvable:$true] %s25_s23 }
   0xb   :  { %28 = dma.hbm_to_vmem [thread:$0]  %s24_s17, 128, %s26_s23, [#allocation5]  }
   0xc   :  { %s46_s24 = sshll.u32 %s489_s4, 4  ;;  %s73_s0 = sshll.u32 %s596_s5, 4  ;;  %s47_s24 = int_to_ptr.vmem [resolvable:$true] %s46_s24  ;;  %s74_s0 = int_to_ptr.hbm [resolvable:$true] %s73_s0 }
   0xd   :  { %52 = dma.hbm_to_vmem [thread:$0]  %s45_s21, 384, %s47_s24, [#allocation8], %s486_s1, %s486_s1, %s487_s18  }
   0xe   :  { %s490_s27 = smov [#allocation12]  }
   0xf   :  { %s75_s28 = sshll.u32 %s490_s27, 4  ;;  %s76_s28 = int_to_ptr.vmem [resolvable:$true] %s75_s28 }
  0x10   :  { %78 = dma.hbm_to_vmem [thread:$0]  %s74_s0, 64, %s76_s28, [#allocation11]  }
  0x11   :  { %476 = dma.done.wait [#allocation5], 128  }
  0x12   :  { %477 = vsyncadd [#allocation5], 4294967168 }
  0x13   :  { %478 = dma.done.wait [#allocation8], 512  }
  0x14   :  { %479 = vsyncadd [#allocation8], 4294966784 }
  0x15   :  { %480 = dma.done.wait [#allocation11], 576  }
  0x16   :  { %481 = vsyncadd [#allocation11], 4294966720  ;;  %vm116_vm0 = vcmask 1040384   ;;  %v111_v0 = vld [vmem:[#allocation9 + $0x10] sm:$0x1]  ;;  %v110_v1 = vld [vmem:[#allocation9 + $0x8] sm:$0xff] }
  0x17   :  { %vm106_vm1 = vcmask 261120   ;;  %306 = vmatpush.msk.msra.mxu0 %vm116_vm0, %v111_v0  ;;  %v175_v2 = vld [vmem:[#allocation10 + $0x18] sm:$0xff]  ;;  %v174_v3 = vld [vmem:[#allocation10 + $0x10] sm:$0xff]  ;;  %v109_v4 = vld [vmem:[#allocation9] sm:$0xff]  ;;  %vm112_vm2 = vcmask 138240   ;;  %s491_s13 = smov 64  }
  0x18   :  { %v108_v5 = vld [vmem:[#allocation4] sm:$0xff]  ;;  %195 = vmatpush.msra.mxu2 %v175_v2  ;;  %v105_v6 = vld [vmem:[#allocation7] sm:$0xff]  ;;  %v173_v7 = vld [vmem:[#allocation10 + $0x8] sm:$0xff]  ;;  %s493_s14 = smov 32   ;;  %s494_s22 = smov [#allocation13]   ;;  %vm281_vm7 = vcmask 7168  }
  0x19   :  { %134 = vmatpush.msra.mxu0 %v110_v1  ;;  %107 = vst.msk [vmem:[#allocation13] sm:$0xff] %vm106_vm1, %v105_v6  ;;  %v144_v8 = vld [vmem:[%s594_s3 + $0x18] sm:$0xff]  ;;  %v143_v9 = vld [vmem:[%s594_s3 + $0x10] sm:$0xff]  ;;  %v142_v12 = vld [vmem:[%s594_s3 + $0x8] sm:$0xff]  ;;  %s290_s23 = sshll.u32 %s494_s22, 4  ;;  %s292_s25 = sshll.u32 %s599_s8, 4  ;;  %s291_s23 = int_to_ptr.vmem [resolvable:$true] %s290_s23  ;;  %s293_s25 = int_to_ptr.hbm [resolvable:$true] %s292_s25 }
  0x1a   :  { %196 = vmatpush.msra.mxu2 %v174_v3  ;;  %163 = vmatpush.msra.mxu1 %v144_v8  ;;  %v172_v10 = vld [vmem:[#allocation10] sm:$0xff]  ;;  %v141_v13 = vld [vmem:[%s594_s3] sm:$0xff]  ;;  %s492_s3 = smov 96   ;;  %v255_v47 = vld [vmem:[%s597_s6 + $0x18] sm:$0xff] }
  0x1b   :  { %135 = vmatpush.msra.mxu0 %v109_v4  ;;  %v323_v16 = vld [vmem:[#allocation12 + $0x1] ss:$0 sm:$0xff]  ;;  %v324_v19 = vld [vmem:[#allocation12] ss:$0 sm:$0xff]  ;;  %273 = vmatpush.msra.mxu3 %v255_v47  ;;  %v253_v49 = vld [vmem:[%s597_s6 + $0x8] sm:$0xff] }
  0x1c   :  { %307 = vmatmul.msk.f32.vlgmr.msra.gmra.mxu0 %vm112_vm2, %v108_v5  ;;  %197 = vmatpush.msra.mxu2 %v173_v7  ;;  %v254_v48 = vld [vmem:[%s597_s6 + $0x10] sm:$0xff]  ;;  %v252_v50 = vld [vmem:[%s597_s6] sm:$0xff] }
  0x1d   :  { %164 = vmatpush.msra.mxu1 %v143_v9  ;;  %274 = vmatpush.msra.mxu3 %v254_v48  ;;  %v325_v53 = vld [vmem:[#allocation12 + $0x2] ss:$0 sm:$0xff] }
  0x1e   :  { %198 = vmatpush.msra.mxu2 %v172_v10 }
  0x1f   :  { %165 = vmatpush.msra.mxu1 %v142_v12  ;;  %275 = vmatpush.msra.mxu3 %v253_v49 }
  0x20   :  { %v177_v11 = vld [vmem:[#allocation13] sm:$0xff] }
  0x21   :  { %309 = vmatmul.msk.f32.vlgmr.msra.gmra.mxu2 %vm106_vm1, %v177_v11  ;;  %166 = vmatpush.msra.mxu1 %v141_v13 }
  0x22   :  { %276 = vmatpush.msra.mxu3 %v252_v50 }
  0x99   :  { %v137_v14 = vpop.f32.mrf.mxu0 }
  0x9a   :  { %v140_v15 = vmax.f32 %v137_v14, 0.0 }
  0x9c   :  { %308 = vmatmul.msk.f32.vlgmr.msra.gmra.mxu1 %vm106_vm1, %v140_v15 }
  0xa4   :  { %v200_v17 = vpop.f32.mrf.mxu2 }
  0xa5   :  { %v201_v18 = vadd.f32 %v323_v16, %v200_v17 }
  0xa7   :  { %224 = vrot.lane.b32.xlu0 %v201_v18, %s491_s13 }
 0x119   :  { %v168_v20 = vpop.f32.mrf.mxu1  ;;  %v225_v33 = vpop.permute.xlu0 %224 }
 0x11a   :  { %v169_v21 = vadd.f32 %v324_v19, %v168_v20 }
 0x11c   :  { %v203_v22 = vadd.f32 %v201_v18, %v169_v21 }
 0x11e   :  { %v310_v23 = vmul.f32 -1.442695, %v203_v22 }
 0x120   :  { %326 = vpow2.f32 %v310_v23 }
 0x126   :  { %v327_v24 = vpop.eup %326 }
 0x127   :  { %v207_v25 = vadd.f32 1.0, %v327_v24 }
 0x129   :  { %328 = vrcp.f32 %v207_v25  ;;  %v219_v29 = vand.u32 2147483648, %v207_v25  ;;  %v217_v31 = vand.u32 2147483647, %v207_v25  ;;  %vm213_vm4 = vweird.f32 %v207_v25 }
 0x12b   :  { %v220_v34 = vor.u32 1.1754944e-38, %v219_v29  ;;  %vm218_vm6 = vcmp.eq.f32.partialorder %v217_v31, 8.507059e+37 }
 0x12f   :  { %v329_v26 = vpop.eup %328 }
 0x130   :  { %v209_v27 = vmul.f32 %v329_v26, %v207_v25  ;;  %vm214_vm3 = vweird.f32 %v329_v26 }
 0x131   :  { %vm215_vm5 = vmor %vm213_vm4, %vm214_vm3 }
 0x132   :  { %v210_v28 = vsub.f32 1.0, %v209_v27 }
 0x134   :  { %v211_v30 = vmul.f32 %v329_v26, %v210_v28 }
 0x136   :  { %v212_v32 = vadd.f32 %v329_v26, %v211_v30 }
 0x138   :  { %v216_v35 = vsel %vm215_vm5, %v329_v26, %v212_v32 }
 0x139   :  { %v221_v36 = vsel %vm218_vm6, %v220_v34, %v216_v35 }
 0x13a   :  { %v227_v37 = vmul.f32 %v225_v33, %v221_v36  ;;  %v234_v42 = vsub.f32 1.0, %v221_v36 }
 0x13c   :  { %229 = vrot.lane.b32.xlu0 %v227_v37, %s491_s13 }
 0x1ae   :  { %v230_v38 = vpop.permute.xlu0 %229 }
 0x1af   :  { %v232_v39 = vadd.f32 %v230_v38, %v169_v21 }
 0x1b1   :  { %330 = vtanh.f32 %v232_v39 }
 0x1b7   :  { %v331_v40 = vpop.eup %330 }
 0x1b8   :  { %236 = vrot.lane.b32.xlu1 %v331_v40, %s492_s3 }
 0x1c0   :  { %240 = vrot.lane.b32.xlu1 %v177_v11, %s493_s14 }
 0x22a   :  { %v237_v41 = vpop.permute.xlu1 %236 }
 0x22b   :  { %v239_v44 = vmul.f32 %v237_v41, %v234_v42 }
 0x232   :  { %v241_v43 = vpop.permute.xlu1 %240 }
 0x233   :  { %v243_v45 = vmul.f32 %v241_v43, %v221_v36 }
 0x235   :  { %v244_v46 = vadd.f32 %v243_v45, %v239_v44 }
 0x237   :  { %246 = vrot.lane.b32.xlu2 %v244_v46, %s492_s3 }
 0x291   :  { %v247_v51 = vpop.permute.xlu2 %246 }
 0x292   :  { %249 = vst.msk [vmem:[#allocation3] sm:$0xff] %vm106_vm1, %v247_v51 }
 0x293   :  { %250 = vst.msk [vmem:[#allocation13] sm:$0xff] %vm106_vm1, %v247_v51 }
 0x294   :  { %295 = dma.vmem_to_hbm [thread:$0]  %s291_s23, 128, %s293_s25, [#allocation6]  }
 0x299   :  { %v251_v52 = vld [vmem:[#allocation3] sm:$0xff] }
 0x29a   :  { %311 = vmatmul.msk.f32.vlgmr.msra.gmra.mxu3 %vm106_vm1, %v251_v52 }
 0x31d   :  { %v278_v54 = vpop.f32.mrf.mxu3 }
 0x31e   :  { %v279_v55 = vadd.f32 %v325_v53, %v278_v54 }
 0x320   :  { %282 = vst.msk [vmem:[%s598_s7] sm:$0xff] %vm281_vm7, %v279_v55 }
 0x321   :  { %482 = dma.done.wait [#allocation6], 128  }
 0x322   :  { %483 = vsyncadd [#allocation6], 4294967168 }
 0x323   :  { %302 = vsyncpa [#allocation5], 1 }
 0x324   :  { %303 = vsyncpa [#allocation8], 1 }
 0x325   :  { %304 = vsyncpa [#allocation11], 1 }
 0x326   :  { %305 = vsyncpa [#allocation6], 1 }

</bundles_post_ra>
